<compile_context>
chip_gen: v6e
topology: v6e:2x2x1
jax: 0.10.0
libtpu: 0.0.40
codegen_flags: <defaults>
</compile_context>

<pallas_src>
import functools

import jax
import jax.numpy as jnp
import numpy as np
from jax import lax
from jax.experimental import pallas as pl
from jax.experimental.pallas import tpu as pltpu


def _pick_vmem_limit():
    """~3/4 of physical VMEM, capped at 96 MiB.

    Review: 32 MiB only lifts v5e's default; v5e/v6e have 128 MiB physical
    (=> 96 MiB here), while v7x's 64 MiB part must stay conservative (=> 48 MiB).
    """
    cap = 128 * 1024 * 1024
    try:
        info = pltpu.get_tpu_info()
        cap = int(getattr(info, "vmem_capacity_bytes", cap) or cap)
    except Exception:
        pass
    return max(32 * 1024 * 1024, min(96 * 1024 * 1024, (cap * 3) // 4))


# ---------------- Kernel 1: fused qkv projection + multi-head attention ----- #
def _qkv_attn_kernel(x_ref, wqkv_ref, o_ref, *, num_heads, head_dim, dim, scale):
    # x_ref: (1, N, C) bf16   wqkv_ref: (3C, C) bf16   o_ref: (H, 1, N, hd) bf16
    x = x_ref[0]                                               # (N, C) bf16
    # qkv = x @ Wqkv^T as ONE full-width MXU matmul (contraction on C expressed
    # via dot_general; Wqkv^T never materialized).  f32 accumulation.
    qkv = lax.dot_general(x, wqkv_ref[...], (((1,), (1,)), ((), ())),
                          preferred_element_type=jnp.float32)   # (N, 3C) f32

    # TODO(synk): for long sequences, switch to a flash-style online softmax
    # (q-tile x kv-tile grid axes) instead of the full (N, N) score matrix, move
    # heads onto a grid axis (qkv in a VMEM scratch under pl.when(h == 0)) to
    # bound live ranges and give v7x a second parallel dimension, and batch the
    # K=head_dim matmuls across heads to fill the 256-wide MXU.
    for h in range(num_heads):                     # static loop; H is small (8-16)
        lo = h * head_dim
        q = (qkv[:, lo:lo + head_dim] * scale).astype(jnp.bfloat16)       # (N, hd)
        k = qkv[:, dim + lo:dim + lo + head_dim].astype(jnp.bfloat16)     # (N, hd)
        v = qkv[:, 2 * dim + lo:2 * dim + lo + head_dim].astype(jnp.bfloat16)

        # scores = q @ k^T (MXU consumes the transposed operand via dot_general).
        s = lax.dot_general(q, k, (((1,), (1,)), ((), ())),
                            preferred_element_type=jnp.float32)           # (N, N)
        m = jnp.max(s, axis=-1, keepdims=True)                            # f32 softmax
        p = jnp.exp(s - m)
        l = jnp.sum(p, axis=-1, keepdims=True)
        o = jnp.dot(p.astype(jnp.bfloat16), v,
                    preferred_element_type=jnp.float32)                   # (N, hd)
        o = o * pl.reciprocal(l, approx=True)      # EUP divide; attn_drop(p=0) = id
        # TODO(synk): last dim = head_dim (<128) makes this a masked store; a
        # lane-dense (H, B, N*hd) layout needs an in-kernel (N,hd)->(N*hd)
        # relayout of comparable cost -- revisit with a head-batched layout.
        o_ref[h, 0] = o.astype(o_ref.dtype)


def _fused_qkv_attention(x_bf16, w_qkv_bf16, num_heads, scale, vmem_limit):
    B, N, C = x_bf16.shape
    hd = C // num_heads
    kernel = functools.partial(_qkv_attn_kernel, num_heads=num_heads,
                               head_dim=hd, dim=C, scale=scale)
    return pl.pallas_call(
        kernel,
        # bf16 intermediate: halves HBM writeback + kernel-2 operand DMA.
        out_shape=jax.ShapeDtypeStruct((num_heads, B, N, hd), jnp.bfloat16),
        grid=(B,),
        in_specs=[
            pl.BlockSpec((1, N, C), lambda b: (b, 0, 0)),
            pl.BlockSpec((3 * C, C), lambda b: (0, 0)),   # weight stays resident
        ],
        out_specs=pl.BlockSpec((num_heads, 1, N, hd), lambda b: (0, b, 0, 0)),
        compiler_params=pltpu.CompilerParams(
            dimension_semantics=("parallel",),            # batch over 2 TCs on v7x
            vmem_limit_bytes=vmem_limit,
        ),
    )(x_bf16, w_qkv_bf16)


# ---------------- Kernel 2: single-pass output projection (matmul + bias) --- #
def _proj_kernel(y_ref, w_ref, b_ref, o_ref):
    # y_ref: (tm, K) bf16   w_ref: (Nout, K) bf16   b_ref: (1, Nout) f32
    # Full-K / full-Nout resident => one pass over the activation, no K-axis
    # accumulator, bias fused into the single store.
    acc = lax.dot_general(y_ref[...], w_ref[...], (((1,), (1,)), ((), ())),
                          preferred_element_type=jnp.float32)
    o_ref[...] = (acc + b_ref[...]).astype(o_ref.dtype)


def _proj_matmul_bias(y2d, w_proj_bf16, bias, vmem_limit, *, tm=256):
    M, K = y2d.shape
    Nout = w_proj_bf16.shape[0]
    tm = min(tm, M)
    return pl.pallas_call(
        _proj_kernel,
        out_shape=jax.ShapeDtypeStruct((M, Nout), jnp.float32),
        grid=(pl.cdiv(M, tm),),
        in_specs=[
            pl.BlockSpec((tm, K), lambda i: (i, 0)),
            pl.BlockSpec((Nout, K), lambda i: (0, 0)),   # W resident, (out,in) layout
            pl.BlockSpec((1, Nout), lambda i: (0, 0)),
        ],
        out_specs=pl.BlockSpec((tm, Nout), lambda i: (i, 0)),
        compiler_params=pltpu.CompilerParams(
            dimension_semantics=("parallel",),
            vmem_limit_bytes=vmem_limit,
        ),
    )(y2d, w_proj_bf16, bias.reshape(1, Nout).astype(jnp.float32))


# ------------------------------ host wrapper -------------------------------- #
def attention_forward(x, w_qkv, w_proj, b_proj, num_heads, scale):
    """Mirrors Attention.forward (qkv_bias=False, both dropouts p=0 => identity)."""
    B, N, C = x.shape
    assert C % num_heads == 0
    vmem_limit = _pick_vmem_limit()

    # bf16 MXU operands (f32 accumulation happens inside the kernels).
    x_bf = x.astype(jnp.bfloat16)
    wq_bf = w_qkv.astype(jnp.bfloat16)       # (3C, C), PyTorch layout
    wp_bf = w_proj.astype(jnp.bfloat16)      # (C, C),  PyTorch layout

    # Module semantics: chunk(3) keeps a unit dim, transpose(1,2) swaps H and B,
    # so reshape(B, N, -1) reinterprets an (H, B, N, hd)-ordered buffer.  Kernel 1
    # emits exactly that order, making the reshape below a free reinterpretation.
    y = _fused_qkv_attention(x_bf, wq_bf, num_heads, scale, vmem_limit)
    y2d = y.reshape(B * N, C)

    out2d = _proj_matmul_bias(y2d, wp_bf, b_proj, vmem_limit)   # proj_drop(p=0) = id
    return out2d.reshape(B, N, C)


# ------------------------------ pure-JAX ref -------------------------------- #
def _ref_forward(x, w_qkv, w_proj, b_proj, num_heads, scale):
    """Literal transcription of the PyTorch forward (including .chunk(3))."""
    B, N, C = x.shape
    hd = C // num_heads
    qkv = (x @ w_qkv.T).reshape(B, N, 3, num_heads, hd).transpose(2, 0, 3, 1, 4)
    q, k, v = jnp.split(qkv, 3, axis=0)                       # each (1, B, H, N, hd)
    attn = jax.nn.softmax((q @ jnp.swapaxes(k, -2, -1)) * scale, axis=-1)
    y = jnp.swapaxes(attn @ v, 1, 2).reshape(B, N, -1)        # torch .transpose(1,2).reshape
    return y @ w_proj.T + b_proj


# ---------------------------------- main ------------------------------------ #
if __name__ == "__main__":
    B, N, C, H = 2, 8, 32, 8
    head_dim = C // H
    scale = head_dim ** (-0.5)

    key = jax.random.PRNGKey(0)
    k1, k2, k3, k4 = jax.random.split(key, 4)
    x = jax.random.normal(k1, (B, N, C), jnp.float32)
    # nn.Linear(dim, 3*dim, bias=False): weight (3C, C)
    w_qkv = jax.random.normal(k2, (3 * C, C), jnp.float32) * 0.05
    # nn.Linear(dim, dim): weight (C, C), bias (C,)
    w_proj = jax.random.normal(k3, (C, C), jnp.float32) * 0.05
    b_proj = jax.random.normal(k4, (C,), jnp.float32) * 0.05

    out = attention_forward(x, w_qkv, w_proj, b_proj, H, scale)
    out = jax.block_until_ready(out)

    ref = _ref_forward(x, w_qkv, w_proj, b_proj, H, scale)
    # bf16 MXU operands / bf16 intermediate + approx reciprocal => loose tolerances.
    np.testing.assert_allclose(np.asarray(out), np.asarray(ref),
                               rtol=5e-2, atol=1e-2)
    print("KERNEL_OK")
</pallas_src>

<mosaic_0001>
module attributes {stable_mosaic.version = 11 : i64} {
  func.func @_qkv_attn_kernel(%arg0: i32, %arg1: memref<1x8x32xbf16, #tpu.memory_space<vmem>>, %arg2: memref<96x32xbf16, #tpu.memory_space<vmem>>, %arg3: memref<8x1x8x4xbf16, #tpu.memory_space<vmem>>) attributes {dimension_semantics = [#tpu.dimension_semantics<parallel>], iteration_bounds = array<i64: 2>, scalar_prefetch = 0 : i64, scratch_operands = 0 : i64, tpu.core_type = #tpu.core_type<tc>, window_params = [{transform_indices = @transform_0, window_bounds = array<i64: 1, 8, 32>}, {pipeline_mode = #tpu.pipeline_mode<synchronous>, transform_indices = @transform_1, window_bounds = array<i64: 96, 32>}, {transform_indices = @transform_2, window_bounds = array<i64: 8, 1, 8, 4>}]} {
    %c0 = arith.constant 0 : index
    %c0_0 = arith.constant 0 : index
    %c0_1 = arith.constant 0 : index
    %0 = vector.load %arg1[%c0, %c0_0, %c0_1] : memref<1x8x32xbf16, #tpu.memory_space<vmem>>, vector<1x8x32xbf16>
    %1 = vector.shape_cast %0 : vector<1x8x32xbf16> to vector<8x32xbf16>
    %c0_2 = arith.constant 0 : index
    %c0_3 = arith.constant 0 : index
    %2 = vector.load %arg2[%c0_2, %c0_3] : memref<96x32xbf16, #tpu.memory_space<vmem>>, vector<96x32xbf16>
    %cst = arith.constant dense<0.000000e+00> : vector<8x96xf32>
    %3 = tpu.matmul %1, %2, %cst {dimension_numbers = #tpu.dot_dimension_numbers<[1], [1], [0], [0], [0, 0, 1, 0], [], []>} : vector<8x32xbf16>, vector<96x32xbf16>, vector<8x96xf32> -> vector<8x96xf32>
    %4 = vector.extract_strided_slice %3 {offsets = [0, 0], sizes = [8, 4], strides = [1, 1]} : vector<8x96xf32> to vector<8x4xf32>
    %cst_4 = arith.constant 5.000000e-01 : f32
    %5 = vector.broadcast %cst_4 : f32 to vector<8x4xf32>
    %6 = arith.mulf %4, %5 : vector<8x4xf32>
    %7 = arith.truncf %6 : vector<8x4xf32> to vector<8x4xbf16>
    %8 = vector.extract_strided_slice %3 {offsets = [0, 32], sizes = [8, 4], strides = [1, 1]} : vector<8x96xf32> to vector<8x4xf32>
    %9 = arith.truncf %8 : vector<8x4xf32> to vector<8x4xbf16>
    %10 = vector.extract_strided_slice %3 {offsets = [0, 64], sizes = [8, 4], strides = [1, 1]} : vector<8x96xf32> to vector<8x4xf32>
    %11 = arith.truncf %10 : vector<8x4xf32> to vector<8x4xbf16>
    %cst_5 = arith.constant dense<0.000000e+00> : vector<8x8xf32>
    %12 = tpu.matmul %7, %9, %cst_5 {dimension_numbers = #tpu.dot_dimension_numbers<[1], [1], [0], [0], [0, 0, 1, 0], [], []>} : vector<8x4xbf16>, vector<8x4xbf16>, vector<8x8xf32> -> vector<8x8xf32>
    %cst_6 = arith.constant dense<0xFF800000> : vector<8xf32>
    %13 = vector.multi_reduction <maximumf>, %12, %cst_6 [1] : vector<8x8xf32> to vector<8xf32>
    %14 = vector.shape_cast %13 : vector<8xf32> to vector<8x1xf32>
    %15 = vector.broadcast %14 : vector<8x1xf32> to vector<8x8xf32>
    %16 = arith.subf %12, %15 : vector<8x8xf32>
    %17 = math.exp %16 : vector<8x8xf32>
    %cst_7 = arith.constant dense<0.000000e+00> : vector<8xf32>
    %18 = vector.multi_reduction <add>, %17, %cst_7 [1] : vector<8x8xf32> to vector<8xf32>
    %19 = vector.shape_cast %18 : vector<8xf32> to vector<8x1xf32>
    %20 = arith.truncf %17 : vector<8x8xf32> to vector<8x8xbf16>
    %cst_8 = arith.constant dense<0.000000e+00> : vector<8x4xf32>
    %21 = tpu.matmul %20, %11, %cst_8 {dimension_numbers = #tpu.dot_dimension_numbers<[1], [0], [0], [1], [0, 0, 1, 1], [], []>} : vector<8x8xbf16>, vector<8x4xbf16>, vector<8x4xf32> -> vector<8x4xf32>
    %22 = tpu.reciprocal %19 {approx = true} : vector<8x1xf32> -> vector<8x1xf32>
    %23 = vector.broadcast %22 : vector<8x1xf32> to vector<8x4xf32>
    %24 = arith.mulf %21, %23 : vector<8x4xf32>
    %25 = arith.truncf %24 : vector<8x4xf32> to vector<8x4xbf16>
    %c0_9 = arith.constant 0 : index
    %c0_10 = arith.constant 0 : index
    %c0_11 = arith.constant 0 : index
    %c0_12 = arith.constant 0 : index
    %26 = vector.load %arg3[%c0_9, %c0_10, %c0_11, %c0_12] : memref<8x1x8x4xbf16, #tpu.memory_space<vmem>>, vector<1x1x8x4xbf16>
    %27 = vector.shape_cast %26 : vector<1x1x8x4xbf16> to vector<8x4xbf16>
    %28 = vector.shape_cast %25 : vector<8x4xbf16> to vector<1x1x8x4xbf16>
    tpu.vector_store %arg3[%c0_9, %c0_10, %c0_11, %c0_12], %28 {strides = array<i32>} : memref<8x1x8x4xbf16, #tpu.memory_space<vmem>>, vector<1x1x8x4xbf16>,
    %29 = vector.extract_strided_slice %3 {offsets = [0, 4], sizes = [8, 4], strides = [1, 1]} : vector<8x96xf32> to vector<8x4xf32>
    %cst_13 = arith.constant 5.000000e-01 : f32
    %30 = vector.broadcast %cst_13 : f32 to vector<8x4xf32>
    %31 = arith.mulf %29, %30 : vector<8x4xf32>
    %32 = arith.truncf %31 : vector<8x4xf32> to vector<8x4xbf16>
    %33 = vector.extract_strided_slice %3 {offsets = [0, 36], sizes = [8, 4], strides = [1, 1]} : vector<8x96xf32> to vector<8x4xf32>
    %34 = arith.truncf %33 : vector<8x4xf32> to vector<8x4xbf16>
    %35 = vector.extract_strided_slice %3 {offsets = [0, 68], sizes = [8, 4], strides = [1, 1]} : vector<8x96xf32> to vector<8x4xf32>
    %36 = arith.truncf %35 : vector<8x4xf32> to vector<8x4xbf16>
    %cst_14 = arith.constant dense<0.000000e+00> : vector<8x8xf32>
    %37 = tpu.matmul %32, %34, %cst_14 {dimension_numbers = #tpu.dot_dimension_numbers<[1], [1], [0], [0], [0, 0, 1, 0], [], []>} : vector<8x4xbf16>, vector<8x4xbf16>, vector<8x8xf32> -> vector<8x8xf32>
    %cst_15 = arith.constant dense<0xFF800000> : vector<8xf32>
    %38 = vector.multi_reduction <maximumf>, %37, %cst_15 [1] : vector<8x8xf32> to vector<8xf32>
    %39 = vector.shape_cast %38 : vector<8xf32> to vector<8x1xf32>
    %40 = vector.broadcast %39 : vector<8x1xf32> to vector<8x8xf32>
    %41 = arith.subf %37, %40 : vector<8x8xf32>
    %42 = math.exp %41 : vector<8x8xf32>
    %cst_16 = arith.constant dense<0.000000e+00> : vector<8xf32>
    %43 = vector.multi_reduction <add>, %42, %cst_16 [1] : vector<8x8xf32> to vector<8xf32>
    %44 = vector.shape_cast %43 : vector<8xf32> to vector<8x1xf32>
    %45 = arith.truncf %42 : vector<8x8xf32> to vector<8x8xbf16>
    %cst_17 = arith.constant dense<0.000000e+00> : vector<8x4xf32>
    %46 = tpu.matmul %45, %36, %cst_17 {dimension_numbers = #tpu.dot_dimension_numbers<[1], [0], [0], [1], [0, 0, 1, 1], [], []>} : vector<8x8xbf16>, vector<8x4xbf16>, vector<8x4xf32> -> vector<8x4xf32>
    %47 = tpu.reciprocal %44 {approx = true} : vector<8x1xf32> -> vector<8x1xf32>
    %48 = vector.broadcast %47 : vector<8x1xf32> to vector<8x4xf32>
    %49 = arith.mulf %46, %48 : vector<8x4xf32>
    %50 = arith.truncf %49 : vector<8x4xf32> to vector<8x4xbf16>
    %c1 = arith.constant 1 : index
    %c0_18 = arith.constant 0 : index
    %c0_19 = arith.constant 0 : index
    %c0_20 = arith.constant 0 : index
    %51 = vector.load %arg3[%c1, %c0_18, %c0_19, %c0_20] : memref<8x1x8x4xbf16, #tpu.memory_space<vmem>>, vector<1x1x8x4xbf16>
    %52 = vector.shape_cast %51 : vector<1x1x8x4xbf16> to vector<8x4xbf16>
    %53 = vector.shape_cast %50 : vector<8x4xbf16> to vector<1x1x8x4xbf16>
    tpu.vector_store %arg3[%c1, %c0_18, %c0_19, %c0_20], %53 {strides = array<i32>} : memref<8x1x8x4xbf16, #tpu.memory_space<vmem>>, vector<1x1x8x4xbf16>,
    %54 = vector.extract_strided_slice %3 {offsets = [0, 8], sizes = [8, 4], strides = [1, 1]} : vector<8x96xf32> to vector<8x4xf32>
    %cst_21 = arith.constant 5.000000e-01 : f32
    %55 = vector.broadcast %cst_21 : f32 to vector<8x4xf32>
    %56 = arith.mulf %54, %55 : vector<8x4xf32>
    %57 = arith.truncf %56 : vector<8x4xf32> to vector<8x4xbf16>
    %58 = vector.extract_strided_slice %3 {offsets = [0, 40], sizes = [8, 4], strides = [1, 1]} : vector<8x96xf32> to vector<8x4xf32>
    %59 = arith.truncf %58 : vector<8x4xf32> to vector<8x4xbf16>
    %60 = vector.extract_strided_slice %3 {offsets = [0, 72], sizes = [8, 4], strides = [1, 1]} : vector<8x96xf32> to vector<8x4xf32>
    %61 = arith.truncf %60 : vector<8x4xf32> to vector<8x4xbf16>
    %cst_22 = arith.constant dense<0.000000e+00> : vector<8x8xf32>
    %62 = tpu.matmul %57, %59, %cst_22 {dimension_numbers = #tpu.dot_dimension_numbers<[1], [1], [0], [0], [0, 0, 1, 0], [], []>} : vector<8x4xbf16>, vector<8x4xbf16>, vector<8x8xf32> -> vector<8x8xf32>
    %cst_23 = arith.constant dense<0xFF800000> : vector<8xf32>
    %63 = vector.multi_reduction <maximumf>, %62, %cst_23 [1] : vector<8x8xf32> to vector<8xf32>
    %64 = vector.shape_cast %63 : vector<8xf32> to vector<8x1xf32>
    %65 = vector.broadcast %64 : vector<8x1xf32> to vector<8x8xf32>
    %66 = arith.subf %62, %65 : vector<8x8xf32>
    %67 = math.exp %66 : vector<8x8xf32>
    %cst_24 = arith.constant dense<0.000000e+00> : vector<8xf32>
    %68 = vector.multi_reduction <add>, %67, %cst_24 [1] : vector<8x8xf32> to vector<8xf32>
    %69 = vector.shape_cast %68 : vector<8xf32> to vector<8x1xf32>
    %70 = arith.truncf %67 : vector<8x8xf32> to vector<8x8xbf16>
    %cst_25 = arith.constant dense<0.000000e+00> : vector<8x4xf32>
    %71 = tpu.matmul %70, %61, %cst_25 {dimension_numbers = #tpu.dot_dimension_numbers<[1], [0], [0], [1], [0, 0, 1, 1], [], []>} : vector<8x8xbf16>, vector<8x4xbf16>, vector<8x4xf32> -> vector<8x4xf32>
    %72 = tpu.reciprocal %69 {approx = true} : vector<8x1xf32> -> vector<8x1xf32>
    %73 = vector.broadcast %72 : vector<8x1xf32> to vector<8x4xf32>
    %74 = arith.mulf %71, %73 : vector<8x4xf32>
    %75 = arith.truncf %74 : vector<8x4xf32> to vector<8x4xbf16>
    %c2 = arith.constant 2 : index
    %c0_26 = arith.constant 0 : index
    %c0_27 = arith.constant 0 : index
    %c0_28 = arith.constant 0 : index
    %76 = vector.load %arg3[%c2, %c0_26, %c0_27, %c0_28] : memref<8x1x8x4xbf16, #tpu.memory_space<vmem>>, vector<1x1x8x4xbf16>
    %77 = vector.shape_cast %76 : vector<1x1x8x4xbf16> to vector<8x4xbf16>
    %78 = vector.shape_cast %75 : vector<8x4xbf16> to vector<1x1x8x4xbf16>
    tpu.vector_store %arg3[%c2, %c0_26, %c0_27, %c0_28], %78 {strides = array<i32>} : memref<8x1x8x4xbf16, #tpu.memory_space<vmem>>, vector<1x1x8x4xbf16>,
    %79 = vector.extract_strided_slice %3 {offsets = [0, 12], sizes = [8, 4], strides = [1, 1]} : vector<8x96xf32> to vector<8x4xf32>
    %cst_29 = arith.constant 5.000000e-01 : f32
    %80 = vector.broadcast %cst_29 : f32 to vector<8x4xf32>
    %81 = arith.mulf %79, %80 : vector<8x4xf32>
    %82 = arith.truncf %81 : vector<8x4xf32> to vector<8x4xbf16>
    %83 = vector.extract_strided_slice %3 {offsets = [0, 44], sizes = [8, 4], strides = [1, 1]} : vector<8x96xf32> to vector<8x4xf32>
    %84 = arith.truncf %83 : vector<8x4xf32> to vector<8x4xbf16>
    %85 = vector.extract_strided_slice %3 {offsets = [0, 76], sizes = [8, 4], strides = [1, 1]} : vector<8x96xf32> to vector<8x4xf32>
    %86 = arith.truncf %85 : vector<8x4xf32> to vector<8x4xbf16>
    %cst_30 = arith.constant dense<0.000000e+00> : vector<8x8xf32>
    %87 = tpu.matmul %82, %84, %cst_30 {dimension_numbers = #tpu.dot_dimension_numbers<[1], [1], [0], [0], [0, 0, 1, 0], [], []>} : vector<8x4xbf16>, vector<8x4xbf16>, vector<8x8xf32> -> vector<8x8xf32>
    %cst_31 = arith.constant dense<0xFF800000> : vector<8xf32>
    %88 = vector.multi_reduction <maximumf>, %87, %cst_31 [1] : vector<8x8xf32> to vector<8xf32>
    %89 = vector.shape_cast %88 : vector<8xf32> to vector<8x1xf32>
    %90 = vector.broadcast %89 : vector<8x1xf32> to vector<8x8xf32>
    %91 = arith.subf %87, %90 : vector<8x8xf32>
    %92 = math.exp %91 : vector<8x8xf32>
    %cst_32 = arith.constant dense<0.000000e+00> : vector<8xf32>
    %93 = vector.multi_reduction <add>, %92, %cst_32 [1] : vector<8x8xf32> to vector<8xf32>
    %94 = vector.shape_cast %93 : vector<8xf32> to vector<8x1xf32>
    %95 = arith.truncf %92 : vector<8x8xf32> to vector<8x8xbf16>
    %cst_33 = arith.constant dense<0.000000e+00> : vector<8x4xf32>
    %96 = tpu.matmul %95, %86, %cst_33 {dimension_numbers = #tpu.dot_dimension_numbers<[1], [0], [0], [1], [0, 0, 1, 1], [], []>} : vector<8x8xbf16>, vector<8x4xbf16>, vector<8x4xf32> -> vector<8x4xf32>
    %97 = tpu.reciprocal %94 {approx = true} : vector<8x1xf32> -> vector<8x1xf32>
    %98 = vector.broadcast %97 : vector<8x1xf32> to vector<8x4xf32>
    %99 = arith.mulf %96, %98 : vector<8x4xf32>
    %100 = arith.truncf %99 : vector<8x4xf32> to vector<8x4xbf16>
    %c3 = arith.constant 3 : index
    %c0_34 = arith.constant 0 : index
    %c0_35 = arith.constant 0 : index
    %c0_36 = arith.constant 0 : index
    %101 = vector.load %arg3[%c3, %c0_34, %c0_35, %c0_36] : memref<8x1x8x4xbf16, #tpu.memory_space<vmem>>, vector<1x1x8x4xbf16>
    %102 = vector.shape_cast %101 : vector<1x1x8x4xbf16> to vector<8x4xbf16>
    %103 = vector.shape_cast %100 : vector<8x4xbf16> to vector<1x1x8x4xbf16>
    tpu.vector_store %arg3[%c3, %c0_34, %c0_35, %c0_36], %103 {strides = array<i32>} : memref<8x1x8x4xbf16, #tpu.memory_space<vmem>>, vector<1x1x8x4xbf16>,
    %104 = vector.extract_strided_slice %3 {offsets = [0, 16], sizes = [8, 4], strides = [1, 1]} : vector<8x96xf32> to vector<8x4xf32>
    %cst_37 = arith.constant 5.000000e-01 : f32
    %105 = vector.broadcast %cst_37 : f32 to vector<8x4xf32>
    %106 = arith.mulf %104, %105 : vector<8x4xf32>
    %107 = arith.truncf %106 : vector<8x4xf32> to vector<8x4xbf16>
    %108 = vector.extract_strided_slice %3 {offsets = [0, 48], sizes = [8, 4], strides = [1, 1]} : vector<8x96xf32> to vector<8x4xf32>
    %109 = arith.truncf %108 : vector<8x4xf32> to vector<8x4xbf16>
    %110 = vector.extract_strided_slice %3 {offsets = [0, 80], sizes = [8, 4], strides = [1, 1]} : vector<8x96xf32> to vector<8x4xf32>
    %111 = arith.truncf %110 : vector<8x4xf32> to vector<8x4xbf16>
    %cst_38 = arith.constant dense<0.000000e+00> : vector<8x8xf32>
    %112 = tpu.matmul %107, %109, %cst_38 {dimension_numbers = #tpu.dot_dimension_numbers<[1], [1], [0], [0], [0, 0, 1, 0], [], []>} : vector<8x4xbf16>, vector<8x4xbf16>, vector<8x8xf32> -> vector<8x8xf32>
    %cst_39 = arith.constant dense<0xFF800000> : vector<8xf32>
    %113 = vector.multi_reduction <maximumf>, %112, %cst_39 [1] : vector<8x8xf32> to vector<8xf32>
    %114 = vector.shape_cast %113 : vector<8xf32> to vector<8x1xf32>
    %115 = vector.broadcast %114 : vector<8x1xf32> to vector<8x8xf32>
    %116 = arith.subf %112, %115 : vector<8x8xf32>
    %117 = math.exp %116 : vector<8x8xf32>
    %cst_40 = arith.constant dense<0.000000e+00> : vector<8xf32>
    %118 = vector.multi_reduction <add>, %117, %cst_40 [1] : vector<8x8xf32> to vector<8xf32>
    %119 = vector.shape_cast %118 : vector<8xf32> to vector<8x1xf32>
    %120 = arith.truncf %117 : vector<8x8xf32> to vector<8x8xbf16>
    %cst_41 = arith.constant dense<0.000000e+00> : vector<8x4xf32>
    %121 = tpu.matmul %120, %111, %cst_41 {dimension_numbers = #tpu.dot_dimension_numbers<[1], [0], [0], [1], [0, 0, 1, 1], [], []>} : vector<8x8xbf16>, vector<8x4xbf16>, vector<8x4xf32> -> vector<8x4xf32>
    %122 = tpu.reciprocal %119 {approx = true} : vector<8x1xf32> -> vector<8x1xf32>
    %123 = vector.broadcast %122 : vector<8x1xf32> to vector<8x4xf32>
    %124 = arith.mulf %121, %123 : vector<8x4xf32>
    %125 = arith.truncf %124 : vector<8x4xf32> to vector<8x4xbf16>
    %c4 = arith.constant 4 : index
    %c0_42 = arith.constant 0 : index
    %c0_43 = arith.constant 0 : index
    %c0_44 = arith.constant 0 : index
    %126 = vector.load %arg3[%c4, %c0_42, %c0_43, %c0_44] : memref<8x1x8x4xbf16, #tpu.memory_space<vmem>>, vector<1x1x8x4xbf16>
    %127 = vector.shape_cast %126 : vector<1x1x8x4xbf16> to vector<8x4xbf16>
    %128 = vector.shape_cast %125 : vector<8x4xbf16> to vector<1x1x8x4xbf16>
    tpu.vector_store %arg3[%c4, %c0_42, %c0_43, %c0_44], %128 {strides = array<i32>} : memref<8x1x8x4xbf16, #tpu.memory_space<vmem>>, vector<1x1x8x4xbf16>,
    %129 = vector.extract_strided_slice %3 {offsets = [0, 20], sizes = [8, 4], strides = [1, 1]} : vector<8x96xf32> to vector<8x4xf32>
    %cst_45 = arith.constant 5.000000e-01 : f32
    %130 = vector.broadcast %cst_45 : f32 to vector<8x4xf32>
    %131 = arith.mulf %129, %130 : vector<8x4xf32>
    %132 = arith.truncf %131 : vector<8x4xf32> to vector<8x4xbf16>
    %133 = vector.extract_strided_slice %3 {offsets = [0, 52], sizes = [8, 4], strides = [1, 1]} : vector<8x96xf32> to vector<8x4xf32>
    %134 = arith.truncf %133 : vector<8x4xf32> to vector<8x4xbf16>
    %135 = vector.extract_strided_slice %3 {offsets = [0, 84], sizes = [8, 4], strides = [1, 1]} : vector<8x96xf32> to vector<8x4xf32>
    %136 = arith.truncf %135 : vector<8x4xf32> to vector<8x4xbf16>
    %cst_46 = arith.constant dense<0.000000e+00> : vector<8x8xf32>
    %137 = tpu.matmul %132, %134, %cst_46 {dimension_numbers = #tpu.dot_dimension_numbers<[1], [1], [0], [0], [0, 0, 1, 0], [], []>} : vector<8x4xbf16>, vector<8x4xbf16>, vector<8x8xf32> -> vector<8x8xf32>
    %cst_47 = arith.constant dense<0xFF800000> : vector<8xf32>
    %138 = vector.multi_reduction <maximumf>, %137, %cst_47 [1] : vector<8x8xf32> to vector<8xf32>
    %139 = vector.shape_cast %138 : vector<8xf32> to vector<8x1xf32>
    %140 = vector.broadcast %139 : vector<8x1xf32> to vector<8x8xf32>
    %141 = arith.subf %137, %140 : vector<8x8xf32>
    %142 = math.exp %141 : vector<8x8xf32>
    %cst_48 = arith.constant dense<0.000000e+00> : vector<8xf32>
    %143 = vector.multi_reduction <add>, %142, %cst_48 [1] : vector<8x8xf32> to vector<8xf32>
    %144 = vector.shape_cast %143 : vector<8xf32> to vector<8x1xf32>
    %145 = arith.truncf %142 : vector<8x8xf32> to vector<8x8xbf16>
    %cst_49 = arith.constant dense<0.000000e+00> : vector<8x4xf32>
    %146 = tpu.matmul %145, %136, %cst_49 {dimension_numbers = #tpu.dot_dimension_numbers<[1], [0], [0], [1], [0, 0, 1, 1], [], []>} : vector<8x8xbf16>, vector<8x4xbf16>, vector<8x4xf32> -> vector<8x4xf32>
    %147 = tpu.reciprocal %144 {approx = true} : vector<8x1xf32> -> vector<8x1xf32>
    %148 = vector.broadcast %147 : vector<8x1xf32> to vector<8x4xf32>
    %149 = arith.mulf %146, %148 : vector<8x4xf32>
    %150 = arith.truncf %149 : vector<8x4xf32> to vector<8x4xbf16>
    %c5 = arith.constant 5 : index
    %c0_50 = arith.constant 0 : index
    %c0_51 = arith.constant 0 : index
    %c0_52 = arith.constant 0 : index
    %151 = vector.load %arg3[%c5, %c0_50, %c0_51, %c0_52] : memref<8x1x8x4xbf16, #tpu.memory_space<vmem>>, vector<1x1x8x4xbf16>
    %152 = vector.shape_cast %151 : vector<1x1x8x4xbf16> to vector<8x4xbf16>
    %153 = vector.shape_cast %150 : vector<8x4xbf16> to vector<1x1x8x4xbf16>
    tpu.vector_store %arg3[%c5, %c0_50, %c0_51, %c0_52], %153 {strides = array<i32>} : memref<8x1x8x4xbf16, #tpu.memory_space<vmem>>, vector<1x1x8x4xbf16>,
    %154 = vector.extract_strided_slice %3 {offsets = [0, 24], sizes = [8, 4], strides = [1, 1]} : vector<8x96xf32> to vector<8x4xf32>
    %cst_53 = arith.constant 5.000000e-01 : f32
    %155 = vector.broadcast %cst_53 : f32 to vector<8x4xf32>
    %156 = arith.mulf %154, %155 : vector<8x4xf32>
    %157 = arith.truncf %156 : vector<8x4xf32> to vector<8x4xbf16>
    %158 = vector.extract_strided_slice %3 {offsets = [0, 56], sizes = [8, 4], strides = [1, 1]} : vector<8x96xf32> to vector<8x4xf32>
    %159 = arith.truncf %158 : vector<8x4xf32> to vector<8x4xbf16>
    %160 = vector.extract_strided_slice %3 {offsets = [0, 88], sizes = [8, 4], strides = [1, 1]} : vector<8x96xf32> to vector<8x4xf32>
    %161 = arith.truncf %160 : vector<8x4xf32> to vector<8x4xbf16>
    %cst_54 = arith.constant dense<0.000000e+00> : vector<8x8xf32>
    %162 = tpu.matmul %157, %159, %cst_54 {dimension_numbers = #tpu.dot_dimension_numbers<[1], [1], [0], [0], [0, 0, 1, 0], [], []>} : vector<8x4xbf16>, vector<8x4xbf16>, vector<8x8xf32> -> vector<8x8xf32>
    %cst_55 = arith.constant dense<0xFF800000> : vector<8xf32>
    %163 = vector.multi_reduction <maximumf>, %162, %cst_55 [1] : vector<8x8xf32> to vector<8xf32>
    %164 = vector.shape_cast %163 : vector<8xf32> to vector<8x1xf32>
    %165 = vector.broadcast %164 : vector<8x1xf32> to vector<8x8xf32>
    %166 = arith.subf %162, %165 : vector<8x8xf32>
    %167 = math.exp %166 : vector<8x8xf32>
    %cst_56 = arith.constant dense<0.000000e+00> : vector<8xf32>
    %168 = vector.multi_reduction <add>, %167, %cst_56 [1] : vector<8x8xf32> to vector<8xf32>
    %169 = vector.shape_cast %168 : vector<8xf32> to vector<8x1xf32>
    %170 = arith.truncf %167 : vector<8x8xf32> to vector<8x8xbf16>
    %cst_57 = arith.constant dense<0.000000e+00> : vector<8x4xf32>
    %171 = tpu.matmul %170, %161, %cst_57 {dimension_numbers = #tpu.dot_dimension_numbers<[1], [0], [0], [1], [0, 0, 1, 1], [], []>} : vector<8x8xbf16>, vector<8x4xbf16>, vector<8x4xf32> -> vector<8x4xf32>
    %172 = tpu.reciprocal %169 {approx = true} : vector<8x1xf32> -> vector<8x1xf32>
    %173 = vector.broadcast %172 : vector<8x1xf32> to vector<8x4xf32>
    %174 = arith.mulf %171, %173 : vector<8x4xf32>
    %175 = arith.truncf %174 : vector<8x4xf32> to vector<8x4xbf16>
    %c6 = arith.constant 6 : index
    %c0_58 = arith.constant 0 : index
    %c0_59 = arith.constant 0 : index
    %c0_60 = arith.constant 0 : index
    %176 = vector.load %arg3[%c6, %c0_58, %c0_59, %c0_60] : memref<8x1x8x4xbf16, #tpu.memory_space<vmem>>, vector<1x1x8x4xbf16>
    %177 = vector.shape_cast %176 : vector<1x1x8x4xbf16> to vector<8x4xbf16>
    %178 = vector.shape_cast %175 : vector<8x4xbf16> to vector<1x1x8x4xbf16>
    tpu.vector_store %arg3[%c6, %c0_58, %c0_59, %c0_60], %178 {strides = array<i32>} : memref<8x1x8x4xbf16, #tpu.memory_space<vmem>>, vector<1x1x8x4xbf16>,
    %179 = vector.extract_strided_slice %3 {offsets = [0, 28], sizes = [8, 4], strides = [1, 1]} : vector<8x96xf32> to vector<8x4xf32>
    %cst_61 = arith.constant 5.000000e-01 : f32
    %180 = vector.broadcast %cst_61 : f32 to vector<8x4xf32>
    %181 = arith.mulf %179, %180 : vector<8x4xf32>
    %182 = arith.truncf %181 : vector<8x4xf32> to vector<8x4xbf16>
    %183 = vector.extract_strided_slice %3 {offsets = [0, 60], sizes = [8, 4], strides = [1, 1]} : vector<8x96xf32> to vector<8x4xf32>
    %184 = arith.truncf %183 : vector<8x4xf32> to vector<8x4xbf16>
    %185 = vector.extract_strided_slice %3 {offsets = [0, 92], sizes = [8, 4], strides = [1, 1]} : vector<8x96xf32> to vector<8x4xf32>
    %186 = arith.truncf %185 : vector<8x4xf32> to vector<8x4xbf16>
    %cst_62 = arith.constant dense<0.000000e+00> : vector<8x8xf32>
    %187 = tpu.matmul %182, %184, %cst_62 {dimension_numbers = #tpu.dot_dimension_numbers<[1], [1], [0], [0], [0, 0, 1, 0], [], []>} : vector<8x4xbf16>, vector<8x4xbf16>, vector<8x8xf32> -> vector<8x8xf32>
    %cst_63 = arith.constant dense<0xFF800000> : vector<8xf32>
    %188 = vector.multi_reduction <maximumf>, %187, %cst_63 [1] : vector<8x8xf32> to vector<8xf32>
    %189 = vector.shape_cast %188 : vector<8xf32> to vector<8x1xf32>
    %190 = vector.broadcast %189 : vector<8x1xf32> to vector<8x8xf32>
    %191 = arith.subf %187, %190 : vector<8x8xf32>
    %192 = math.exp %191 : vector<8x8xf32>
    %cst_64 = arith.constant dense<0.000000e+00> : vector<8xf32>
    %193 = vector.multi_reduction <add>, %192, %cst_64 [1] : vector<8x8xf32> to vector<8xf32>
    %194 = vector.shape_cast %193 : vector<8xf32> to vector<8x1xf32>
    %195 = arith.truncf %192 : vector<8x8xf32> to vector<8x8xbf16>
    %cst_65 = arith.constant dense<0.000000e+00> : vector<8x4xf32>
    %196 = tpu.matmul %195, %186, %cst_65 {dimension_numbers = #tpu.dot_dimension_numbers<[1], [0], [0], [1], [0, 0, 1, 1], [], []>} : vector<8x8xbf16>, vector<8x4xbf16>, vector<8x4xf32> -> vector<8x4xf32>
    %197 = tpu.reciprocal %194 {approx = true} : vector<8x1xf32> -> vector<8x1xf32>
    %198 = vector.broadcast %197 : vector<8x1xf32> to vector<8x4xf32>
    %199 = arith.mulf %196, %198 : vector<8x4xf32>
    %200 = arith.truncf %199 : vector<8x4xf32> to vector<8x4xbf16>
    %c7 = arith.constant 7 : index
    %c0_66 = arith.constant 0 : index
    %c0_67 = arith.constant 0 : index
    %c0_68 = arith.constant 0 : index
    %201 = vector.load %arg3[%c7, %c0_66, %c0_67, %c0_68] : memref<8x1x8x4xbf16, #tpu.memory_space<vmem>>, vector<1x1x8x4xbf16>
    %202 = vector.shape_cast %201 : vector<1x1x8x4xbf16> to vector<8x4xbf16>
    %203 = vector.shape_cast %200 : vector<8x4xbf16> to vector<1x1x8x4xbf16>
    tpu.vector_store %arg3[%c7, %c0_66, %c0_67, %c0_68], %203 {strides = array<i32>} : memref<8x1x8x4xbf16, #tpu.memory_space<vmem>>, vector<1x1x8x4xbf16>,
    return
  }
  func.func @transform_0(%arg0: i32) -> (i32, i32, i32) {
    %c0_i32 = arith.constant 0 : i32
    %c0_i32_0 = arith.constant 0 : i32
    %c0_i32_1 = arith.constant 0 : i32
    return %arg0, %c0_i32, %c0_i32_0 : i32, i32, i32
  }
  func.func @transform_1(%arg0: i32) -> (i32, i32) {
    %c0_i32 = arith.constant 0 : i32
    %c0_i32_0 = arith.constant 0 : i32
    %c0_i32_1 = arith.constant 0 : i32
    return %c0_i32, %c0_i32_0 : i32, i32
  }
  func.func @transform_2(%arg0: i32) -> (i32, i32, i32, i32) {
    %c0_i32 = arith.constant 0 : i32
    %c0_i32_0 = arith.constant 0 : i32
    %c0_i32_1 = arith.constant 0 : i32
    %c0_i32_2 = arith.constant 0 : i32
    return %c0_i32, %arg0, %c0_i32_0, %c0_i32_1 : i32, i32, i32, i32
  }
}

</mosaic_0001>

<bundles_post_ra>
// kernel: tpu_custom_call.1
= control target key start
LH: loop header
LB: loop body
LE: loop exit
PB: predicated region body
PF: predicated region fallthrough
CT: control target
= control target key end

     0   :  { %s1622_s9 = smov 0   ;;  %s1624_s10 = smov 0   ;;  %s1877_s0 = inlined_call_operand.vmem [shape: bf16[2,8,32], index: 0, kind: input, shape index: {}]   ;;  %s1878_s1 = inlined_call_operand.vmem [shape: bf16[96,32], index: 1, kind: input, shape index: {}]   ;;  %s1879_s2 = inlined_call_operand.vmem [shape: bf16[8,2,8,4], index: 2, kind: output, shape index: {}]  }
   0x1   :  { %s1626_s11 = smov 0  }
   0x2 LB: > { %s1635_s12 = sadd.s32 4294967295, %s1580_s11   ;;  %s1637_s13 = sadd.s32 1, %s1580_s11   ;;  %s1580_s11 = sphi %s1626_s11, %s1883_s11   ;;  %s1576_s10 = sphi %s1624_s10, %s1882_s10   ;;  %s1572_s9 = sphi %s1622_s9, %s1881_s9  }
   0x3   : > { %s63_s14 = ssub.s32 %s1580_s11, %s1637_s13  ;;  %s66_s15 = sadd.s32 1, %s1576_s10 }
   0x4   : > { %p64_p0 = scmp.eq.s32.totalorder %s63_s14, 0  ;;  %p76_p1 = scmp.ne.s32.totalorder %s1576_s10, %s1572_s9 }
   0x5   : > { %p77_p2 = scmp.eq.s32.totalorder %s1635_s12, 1  ;;  %p1283_p3 = scmp.ge.s32.totalorder %s1580_s11, 1 }
   0x6   : > { %s1645_s16 = scalar_select %p64_p0, %s1576_s10, %s66_s15  }
   0x7   : > { %p1647_p4 = por %p77_p2, %p76_p1  ;;  %p111_p5 = scmp.lt.s32.totalorder %s1580_s11, 3 }
   0x9   : > { %p112_p6 = pnand %p1283_p3, %p111_p5 }
   0xa   : > { %p131_p7 = scmp.lt.s32.totalorder (!%p112_p6), %s1635_s12, 1  ;;  %s1584_s7 = smov (!%p112_p6), 64  }
   0xb   : > { %115 = sbr.rel (%p112_p6) target bundleno = 1709 (0x6ad), region = 28  ;;  %s1585_s8 = smov (!%p112_p6), 96  }
   0xc   : > { %s1586_s11 = smov (!%p112_p6), 92   ;;  %s1587_s14 = smov (!%p112_p6), 124  }
   0xd   : > { %s1588_s15 = smov (!%p112_p6), 60   ;;  %s1589_s18 = smov (!%p112_p6), 120  }
   0xe   : > { %s1590_s19 = smov (!%p112_p6), 84   ;;  %s1591_s20 = smov (!%p112_p6), 116  }
   0xf   : > { %s1592_s21 = smov (!%p112_p6), 112   ;;  %s1593_s22 = smov (!%p112_p6), 108  }
  0x10   : > { %v1520_v0 = vld [vmem:[%s1878_s1 + $0x28] sm:$0xff]   ;;  %v1582_v1 = vmov 0.0   ;;  %vm179_vm0 = vcmask 261120   ;;  %v1521_v3 = vld [vmem:[%s1878_s1 + $0x20] sm:$0xff]   ;;  %vm1583_vm1 = vmmov 0   ;;  %v1522_v5 = vld [vmem:[%s1878_s1 + $0x18] sm:$0xff]  }
  0x11   : > { %1359 = vmatprep.subr.bf16.mxu0 %v1582_v1  ;;  %1375 = vmatprep.subr.bf16.mxu1 %v1582_v1  ;;  %v199_v2 = vsel %vm179_vm0, %v1520_v0, 0  ;;  %v196_v4 = vsel %vm179_vm0, %v1521_v3, 0  ;;  %v193_v6 = vsel %vm179_vm0, %v1522_v5, 0  ;;  %v1523_v7 = vld [vmem:[%s1878_s1 + $0x10] sm:$0xff]   ;;  %v1524_v9 = vld [vmem:[%s1878_s1 + $0x8] sm:$0xff]   ;;  %v1525_v11 = vld [vmem:[%s1878_s1] sm:$0xff]  }
  0x12   : > { %1360 = vmatpush3.bf16.xpose.msra.mxu0 %v199_v2  ;;  %1371 = vmatprep.mubr.msk.bf16.mxu0 %vm1583_vm1, %v1582_v1  ;;  %v190_v8 = vsel %vm179_vm0, %v1523_v7, 0  ;;  %v187_v10 = vsel %vm179_vm0, %v1524_v9, 0  ;;  %s132_s30 = scalar_select %p131_p7, %s1635_s12, 1  ;;  %v184_v12 = vsel %vm179_vm0, %v1525_v11, 0  ;;  %vm247_vm2 = vcmask 31744  }
  0x13   : > { %1361 = vmatprep.subr.bf16.mxu0 %v1582_v1  ;;  %1377 = vmatprep.mubr.msk.bf16.mxu1 %vm1583_vm1, %v1582_v1  ;;  %vm310_vm3 = vcmask 1043456   ;;  %vm294_vm4 = vcmask 64512   ;;  %s1594_s23 = smov 104   ;;  %s1595_s24 = smov 100   ;;  %vm357_vm5 = vcmask 27648  }
  0x14   : > { %s1285_s3 = sshll.u32 %s132_s30, 2  ;;  %s1596_s25 = smov 88  }
  0x15   : > { %s134_s6 = scalar_lea.vmem %s1877_s0, %s1285_s3  ;;  %s1597_s26 = smov 80  }
  0x16   : > { %v136_v13 = vld [vmem:[%s134_s6] sm:$0xf]  ;;  %s1598_s27 = smov 76   ;;  %s1599_s28 = smov 72  }
  0x17   : > { %s1600_s29 = smov 68   ;;  %s1601_s30 = smov 56  }
  0x18   : > { %s1602_s3 = smov 52   ;;  %s1603_s4 = smov 48  }
  0x19   : > { %s1604_s5 = smov 44   ;;  %s1605_s6 = smov 40  }
  0x1a   : > { %1362 = vmatpush3.bf16.xpose.msra.mxu0 %v196_v4 }
  0x1b   : > { %1363 = vmatprep.subr.bf16.mxu0 %v1582_v1 }
  0x22   : > { %1364 = vmatpush3.bf16.xpose.msra.mxu0 %v193_v6 }
  0x23   : > { %1365 = vmatprep.subr.bf16.mxu0 %v1582_v1 }
  0x2a   : > { %1366 = vmatpush3.bf16.xpose.msra.mxu0 %v190_v8 }
  0x2b   : > { %1367 = vmatprep.subr.bf16.mxu0 %v1582_v1 }
  0x32   : > { %1368 = vmatpush3.bf16.xpose.msra.mxu0 %v187_v10 }
  0x33   : > { %1369 = vmatprep.subr.bf16.mxu0 %v1582_v1 }
  0x3a   : > { %1370 = vmatpush3.bf16.xpose.msra.mxu0 %v184_v12 }
  0x3b   : > { %1411 = vmatprep.subr.bf16.mxu0 %v1582_v1 }
  0x41   : > { %1372 = vmatmul.mubr.msk.bf16.vlgmr.msra.gmra.mxu0 %vm179_vm0, %v136_v13 }
  0x42   : > { %1413 = vmatprep.mubr.msk.bf16.mxu0 %vm1583_vm1, %v1582_v1 }
 0x101   : > { %v235_v14 = vpop.f32.mrf.mxu0 }
 0x102   : > { %v1695_v15 = vpack.c.bf16 %v235_v14, %v235_v14  ;;  %v241_v18 = vmul.f32 0.5, %v235_v14 }
 0x103   : > { %v1373_v16 = vpop.f32.mrf.mxu0 }
 0x104   : > { %305 = vrot.lane.b32.xlu1 %v1695_v15, %s1584_s7  ;;  %245 = vrot.lane.b32.xlu0 %v1695_v15, %s1585_s8  ;;  %v242_v20 = vpack.c.bf16 %v241_v18, %v241_v18  ;;  %s1606_s7 = smov 36   ;;  %s128_s8 = sand.u32 1, %s1572_s9  }
 0x105   : > { %v238_v17 = vpop.f32.mrf.mxu0 }
 0x107   : > { %v1374_v19 = vpop.f32.mrf.mxu0 }
 0x108   : > { %362 = vrot.lane.b32.xlu1 %v1695_v15, %s1586_s11  ;;  %s1284_s11 = sshll.u32 %s128_s8, 5 }
 0x109   : > { %s1833_s9 = scalar_lea.vmem [#allocation2], %s1284_s11 }
 0x10c   : > { %360 = vrot.lane.b32.xlu1 %v242_v20, %s1587_s14  ;;  %s1317_s14 = sshll.u32 (%p1647_p4), %s1635_s12, 2 }
 0x176   : > { %v246_v21 = vpop.permute.xlu0 %245  ;;  %v306_v23 = vpop.permute.xlu1 %305 }
 0x177   : > { %v252_v22 = vsel %vm247_vm2, %v246_v21, 0  ;;  %v312_v24 = vsel %vm310_vm3, %v306_v23, 0 }
 0x178   : > { %1376 = vmatpush3.bf16.xpose.msra.mxu1 %v252_v22 }
 0x179   : > { %1381 = vmatprep.subr.bf16.mxu1 %v1582_v1 }
 0x17a   : > { %v363_v38 = vpop.permute.xlu1 %362 }
 0x17b   : > { %v368_v41 = vsel %vm247_vm2, %v363_v38, 0 }
 0x17e   : > { %v361_v42 = vpop.permute.xlu1 %360 }
 0x17f   : > { %1378 = vmatmul.mubr.msk.bf16.vlgmr.msra.gmra.mxu1 %vm247_vm2, %v242_v20 }
 0x180   : > { %1382 = vmatpush3.bf16.msra.mxu1 %v312_v24  ;;  %1383 = vmatprep.mubr.msk.bf16.mxu1 %vm1583_vm1, %v1582_v1 }
 0x181   : > { %1387 = vmatprep.subr.bf16.mxu1 %v1582_v1 }
 0x23f   : > { %v288_v25 = vpop.f32.mrf.mxu1 }
 0x240   : > { %v295_v26 = vsel %vm294_vm4, %v288_v25, -inf }
 0x241   : > { %296 = vmax.xlane.f32.xlu0 %v295_v26  ;;  %v1379_v27 = vpop.f32.mrf.mxu1 }
 0x243   : > { %v291_v28 = vpop.f32.mrf.mxu1 }
 0x245   : > { %v1380_v29 = vpop.f32.mrf.mxu1 }
 0x257   : > { %420 = vrot.lane.b32.xlu0 %v1695_v15, %s1588_s15 }
 0x25b   : > { %473 = vrot.lane.b32.xlu0 %v242_v20, %s1589_s18 }
 0x25f   : > { %588 = vrot.lane.b32.xlu0 %v1695_v15, %s1590_s19  ;;  %s1159_s19 = scalar_lea.vmem (%p1647_p4), %s1879_s2, %s1317_s14 }
 0x263   : > { %586 = vrot.lane.b32.xlu0 %v242_v20, %s1591_s20 }
 0x267   : > { %699 = vrot.lane.b32.xlu0 %v242_v20, %s1592_s21 }
 0x26b   : > { %812 = vrot.lane.b32.xlu0 %v242_v20, %s1593_s22 }
 0x26f   : > { %925 = vrot.lane.b32.xlu0 %v242_v20, %s1594_s23 }
 0x273   : > { %1038 = vrot.lane.b32.xlu0 %v242_v20, %s1595_s24 }
 0x2ca   : > { %v297_v30 = vpop.xlane.xlu0 %296 }
 0x2cb   : > { %v298_v31 = vsub.f32 %v288_v25, %v297_v30 }
 0x2cd   : > { %v299_v32 = vmul.f32 1.442695, %v298_v31 }
 0x2ce   : > { %v421_v33 = vpop.permute.xlu0 %420 }
 0x2cf   : > { %1526 = vpow2.f32 %v299_v32  ;;  %v426_v43 = vsel %vm310_vm3, %v421_v33, 0 }
 0x2d2   : > { %v1710_v34 = vpop.permute.xlu0 %473 }
 0x2d6   : > { %v589_v35 = vpop.permute.xlu0 %588 }
 0x2d7   : > { %v594_v36 = vsel %vm247_vm2, %v589_v35, 0 }
 0x2d8   : > { %1412 = vmatpush3.bf16.xpose.msra.mxu0 %v594_v36 }
 0x2d9   : > { %1423 = vmatprep.subr.bf16.mxu0 %v1582_v1 }
 0x2da   : > { %v587_v40 = vpop.permute.xlu0 %586 }
 0x2dc   : > { %v1714_v37 = vpop.eup %1526 }
 0x2dd   : > { %v304_v39 = vpack.c.bf16 %v1714_v37, %v1714_v37 }
 0x2de   : > { %v700_v2 = vpop.permute.xlu0 %699 }
 0x2df   : > { %1384 = vmatmul.mubr.msk.bf16.vlgmr.msra.gmra.mxu1 %vm294_vm4, %v304_v39  ;;  %1414 = vmatmul.mubr.msk.bf16.vlgmr.msra.gmra.mxu0 %vm247_vm2, %v587_v40 }
 0x2e0   : > { %1388 = vmatpush3.bf16.xpose.msra.mxu1 %v368_v41  ;;  %1389 = vmatprep.mubr.msk.bf16.mxu1 %vm1583_vm1, %v1582_v1 }
 0x2e1   : > { %1393 = vmatprep.subr.bf16.mxu1 %v1582_v1  ;;  %1425 = vmatprep.mubr.msk.bf16.mxu0 %vm1583_vm1, %v1582_v1 }
 0x2e2   : > { %v813_v8 = vpop.permute.xlu0 %812 }
 0x2e6   : > { %v926_v11 = vpop.permute.xlu0 %925 }
 0x2e7   : > { %1390 = vmatmul.mubr.msk.bf16.vlgmr.msra.gmra.mxu1 %vm247_vm2, %v361_v42 }
 0x2e8   : > { %1394 = vmatpush3.bf16.msra.mxu1 %v426_v43  ;;  %1395 = vmatprep.mubr.msk.bf16.mxu1 %vm1583_vm1, %v1582_v1 }
 0x2e9   : > { %1399 = vmatprep.subr.bf16.mxu1 %v1582_v1 }
 0x2ea   : > { %v1039_v13 = vpop.permute.xlu0 %1038 }
 0x39f   : > { %v1731_v44 = vpop.f32.mrf.mxu1  ;;  %v1733_v45 = vpop.f32.mrf.mxu0 }
 0x3a0   : > { %v636_v46 = vsel %vm294_vm4, %v1733_v45, -inf }
 0x3a1   : > { %v1385_v47 = vpop.f32.mrf.mxu1  ;;  %637 = vmax.xlane.f32.xlu0 %v636_v46  ;;  %v1415_v48 = vpop.f32.mrf.mxu0 }
 0x3a3   : > { %v351_v49 = vpop.f32.mrf.mxu1  ;;  %v633_v50 = vpop.f32.mrf.mxu0 }
 0x3a5   : > { %v1386_v51 = vpop.f32.mrf.mxu1  ;;  %v1416_v52 = vpop.f32.mrf.mxu0 }
 0x3a6   : > { %v301_v52 = vsel %vm294_vm4, %v1714_v37, 0.0 }
 0x3a7   : > { %v404_v53 = vpop.f32.mrf.mxu1 }
 0x3a8   : > { %v410_v54 = vsel %vm294_vm4, %v404_v53, -inf }
 0x3a9   : > { %411 = vmax.xlane.f32.xlu1 %v410_v54  ;;  %v1391_v55 = vpop.f32.mrf.mxu1 }
 0x3ab   : > { %v407_v56 = vpop.f32.mrf.mxu1 }
 0x3ad   : > { %v1392_v57 = vpop.f32.mrf.mxu1 }
 0x3ba   : > { %475 = vrot.lane.b32.xlu1 %v1695_v15, %s1596_s25 }
 0x3be   : > { %701 = vrot.lane.b32.xlu1 %v1695_v15, %s1597_s26 }
 0x3c2   : > { %814 = vrot.lane.b32.xlu1 %v1695_v15, %s1598_s27 }
 0x3c6   : > { %927 = vrot.lane.b32.xlu1 %v1695_v15, %s1599_s28 }
 0x3ca   : > { %1040 = vrot.lane.b32.xlu1 %v1695_v15, %s1600_s29 }
 0x42a   : > { %v638_v46 = vpop.xlane.xlu0 %637 }
 0x42b   : > { %v639_v47 = vsub.f32 %v1733_v45, %v638_v46 }
 0x42d   : > { %v640_v48 = vmul.f32 1.442695, %v639_v47 }
 0x432   : > { %v412_v58 = vpop.xlane.xlu1 %411 }
 0x433   : > { %v413_v59 = vsub.f32 %v404_v53, %v412_v58 }
 0x435   : > { %v414_v60 = vmul.f32 1.442695, %v413_v59 }
 0x436   : > { %v476_v61 = vpop.permute.xlu1 %475 }
 0x437   : > { %1528 = vpow2.f32 %v414_v60  ;;  %v481_v6 = vsel %vm247_vm2, %v476_v61, 0 }
 0x438   : > { %1530 = vpow2.f32 %v640_v48 }
 0x43a   : > { %v702_v62 = vpop.permute.xlu1 %701 }
 0x43b   : > { %v707_v63 = vsel %vm247_vm2, %v702_v62, 0 }
 0x43c   : > { %1424 = vmatpush3.bf16.xpose.msra.mxu0 %v707_v63 }
 0x43d   : > { %1435 = vmatprep.subr.bf16.mxu0 %v1582_v1 }
 0x43e   : > { %v815_v0 = vpop.permute.xlu1 %814 }
 0x43f   : > { %v820_v3 = vsel %vm247_vm2, %v815_v0, 0 }
 0x442   : > { %v928_v7 = vpop.permute.xlu1 %927 }
 0x443   : > { %1426 = vmatmul.mubr.msk.bf16.vlgmr.msra.gmra.mxu0 %vm247_vm2, %v700_v2  ;;  %v933_v9 = vsel %vm247_vm2, %v928_v7, 0 }
 0x444   : > { %v1747_v4 = vpop.eup %1528  ;;  %1436 = vmatpush3.bf16.xpose.msra.mxu0 %v820_v3  ;;  %1437 = vmatprep.mubr.msk.bf16.mxu0 %vm1583_vm1, %v1582_v1 }
 0x445   : > { %v419_v5 = vpack.c.bf16 %v1747_v4, %v1747_v4  ;;  %1447 = vmatprep.subr.bf16.mxu0 %v1582_v1  ;;  %v416_v45 = vsel %vm294_vm4, %v1747_v4, 0.0  ;;  %v1531_v50 = vpop.eup %1530 }
 0x446   : > { %v1041_v10 = vpop.permute.xlu1 %1040  ;;  %v642_v51 = vsel %vm294_vm4, %v1531_v50, 0.0 }
 0x447   : > { %1396 = vmatmul.mubr.msk.bf16.vlgmr.msra.gmra.mxu1 %vm294_vm4, %v419_v5  ;;  %v1046_v12 = vsel %vm247_vm2, %v1041_v10, 0 }
 0x448   : > { %1400 = vmatpush3.bf16.xpose.msra.mxu1 %v481_v6  ;;  %1401 = vmatprep.mubr.msk.bf16.mxu1 %vm1583_vm1, %v1582_v1 }
 0x449   : > { %1405 = vmatprep.subr.bf16.mxu1 %v1582_v1 }
 0x44b   : > { %1438 = vmatmul.mubr.msk.bf16.vlgmr.msra.gmra.mxu0 %vm247_vm2, %v813_v8 }
 0x44c   : > { %1448 = vmatpush3.bf16.xpose.msra.mxu0 %v933_v9  ;;  %1449 = vmatprep.mubr.msk.bf16.mxu0 %vm1583_vm1, %v1582_v1 }
 0x44d   : > { %1459 = vmatprep.subr.bf16.mxu0 %v1582_v1 }
 0x44f   : > { %1402 = vmatmul.mubr.msk.bf16.vlgmr.msra.gmra.mxu1 %vm247_vm2, %v1710_v34 }
 0x450   : > { %1407 = vmatprep.mubr.msk.bf16.mxu1 %vm1583_vm1, %v1582_v1 }
 0x453   : > { %1450 = vmatmul.mubr.msk.bf16.vlgmr.msra.gmra.mxu0 %vm247_vm2, %v926_v11 }
 0x454   : > { %1460 = vmatpush3.bf16.xpose.msra.mxu0 %v1046_v12  ;;  %1461 = vmatprep.mubr.msk.bf16.mxu0 %vm1583_vm1, %v1582_v1 }
 0x45b   : > { %1462 = vmatmul.mubr.msk.bf16.vlgmr.msra.gmra.mxu0 %vm247_vm2, %v1039_v13 }
 0x503   : > { %v743_v14 = vpop.f32.mrf.mxu0 }
 0x504   : > { %v749_v16 = vsel %vm294_vm4, %v743_v14, -inf }
 0x505   : > { %750 = vmax.xlane.f32.xlu0 %v749_v16  ;;  %v1427_v17 = vpop.f32.mrf.mxu0 }
 0x507   : > { %v1774_v18 = vpop.f32.mrf.mxu1  ;;  %v746_v19 = vpop.f32.mrf.mxu0 }
 0x509   : > { %v1397_v20 = vpop.f32.mrf.mxu1  ;;  %v1428_v21 = vpop.f32.mrf.mxu0 }
 0x50b   : > { %v465_v22 = vpop.f32.mrf.mxu1  ;;  %v856_v23 = vpop.f32.mrf.mxu0 }
 0x50c   : > { %v862_v24 = vsel %vm294_vm4, %v856_v23, -inf }
 0x50d   : > { %v1398_v25 = vpop.f32.mrf.mxu1  ;;  %863 = vmax.xlane.f32.xlu1 %v862_v24  ;;  %v1439_v26 = vpop.f32.mrf.mxu0 }
 0x50f   : > { %v1777_v27 = vpop.f32.mrf.mxu1  ;;  %v859_v28 = vpop.f32.mrf.mxu0 }
 0x510   : > { %v523_v38 = vsel %vm294_vm4, %v1777_v27, -inf }
 0x511   : > { %v1403_v29 = vpop.f32.mrf.mxu1  ;;  %v1440_v30 = vpop.f32.mrf.mxu0 }
 0x513   : > { %v520_v31 = vpop.f32.mrf.mxu1  ;;  %v969_v32 = vpop.f32.mrf.mxu0 }
 0x514   : > { %v975_v33 = vsel %vm294_vm4, %v969_v32, -inf }
 0x515   : > { %v1404_v34 = vpop.f32.mrf.mxu1  ;;  %976 = vmax.xlane.f32.xlu1 %v975_v33  ;;  %v1451_v35 = vpop.f32.mrf.mxu0 }
 0x517   : > { %v972_v36 = vpop.f32.mrf.mxu0 }
 0x519   : > { %524 = vmax.xlane.f32.xlu1 %v523_v38  ;;  %v1452_v39 = vpop.f32.mrf.mxu0 }
 0x51b   : > { %533 = vrot.lane.b32.xlu0 %v1695_v15, %s1601_s30  ;;  %v1783_v40 = vpop.f32.mrf.mxu0 }
 0x51c   : > { %v1088_v49 = vsel %vm294_vm4, %v1783_v40, -inf }
 0x51d   : > { %v1463_v41 = vpop.f32.mrf.mxu0 }
 0x51f   : > { %v1085_v42 = vpop.f32.mrf.mxu0 }
 0x521   : > { %v1464_v43 = vpop.f32.mrf.mxu0 }
 0x52a   : > { %646 = vrot.lane.b32.xlu1 %v1695_v15, %s1602_s3 }
 0x52e   : > { %759 = vrot.lane.b32.xlu1 %v1695_v15, %s1603_s4 }
 0x532   : > { %872 = vrot.lane.b32.xlu1 %v1695_v15, %s1604_s5 }
 0x536   : > { %985 = vrot.lane.b32.xlu1 %v1695_v15, %s1605_s6 }
 0x53a   : > { %1098 = vrot.lane.b32.xlu1 %v1695_v15, %s1606_s7  ;;  %1089 = vmax.xlane.f32.xlu0 %v1088_v49 }
 0x53e   : > { %417 = vadd.xlane.f32.xlu0 %v416_v45 }
 0x542   : > { %643 = vadd.xlane.f32.xlu0 %v642_v51 }
 0x55e   : > { %302 = vadd.xlane.f32.xlu1 %v301_v52 }
 0x58e   : > { %v751_v53 = vpop.xlane.xlu0 %750 }
 0x58f   : > { %v752_v54 = vsub.f32 %v743_v14, %v751_v53  ;;  %v645_v14 = vpack.c.bf16 %v1531_v50, %v1531_v50 }
 0x591   : > { %v753_v55 = vmul.f32 1.442695, %v752_v54 }
 0x592   : > { %v534_v56 = vpop.permute.xlu0 %533 }
 0x593   : > { %1532 = vpow2.f32 %v753_v55  ;;  %v539_v15 = vsel %vm310_vm3, %v534_v56, 0 }
 0x594   : > { %1406 = vmatpush3.bf16.msra.mxu1 %v539_v15 }
 0x595   : > { %1417 = vmatprep.subr.bf16.mxu1 %v1582_v1 }
 0x596   : > { %v864_v57 = vpop.xlane.xlu1 %863 }
 0x597   : > { %v865_v58 = vsub.f32 %v856_v23, %v864_v57 }
 0x599   : > { %v866_v59 = vmul.f32 1.442695, %v865_v58 }
 0x59b   : > { %1534 = vpow2.f32 %v866_v59 }
 0x59e   : > { %v977_v60 = vpop.xlane.xlu1 %976 }
 0x59f   : > { %v978_v62 = vsub.f32 %v969_v32, %v977_v60 }
 0x5a0   : > { %v1533_v61 = vpop.eup %1532 }
 0x5a1   : > { %v755_v37 = vsel %vm294_vm4, %v1533_v61, 0.0  ;;  %v979_v2 = vmul.f32 1.442695, %v978_v62  ;;  %v758_v21 = vpack.c.bf16 %v1533_v61, %v1533_v61 }
 0x5a2   : > { %v525_v63 = vpop.xlane.xlu1 %524  ;;  %756 = vadd.xlane.f32.xlu0 %v755_v37 }
 0x5a3   : > { %v526_v0 = vsub.f32 %v1777_v27, %v525_v63 }
 0x5a5   : > { %v527_v3 = vmul.f32 1.442695, %v526_v0 }
 0x5a6   : > { %v647_v7 = vpop.permute.xlu1 %646 }
 0x5a7   : > { %1536 = vpow2.f32 %v527_v3  ;;  %v652_v11 = vsel %vm310_vm3, %v647_v7, 0 }
 0x5a8   : > { %v1535_v4 = vpop.eup %1534  ;;  %1538 = vpow2.f32 %v979_v2 }
 0x5a9   : > { %v868_v5 = vsel %vm294_vm4, %v1535_v4, 0.0  ;;  %v871_v26 = vpack.c.bf16 %v1535_v4, %v1535_v4 }
 0x5aa   : > { %869 = vadd.xlane.f32.xlu0 %v868_v5  ;;  %v760_v13 = vpop.permute.xlu1 %759 }
 0x5ab   : > { %v765_v16 = vsel %vm310_vm3, %v760_v13, 0 }
 0x5ae   : > { %v873_v19 = vpop.permute.xlu1 %872 }
 0x5af   : > { %v878_v23 = vsel %vm310_vm3, %v873_v19, 0 }
 0x5b2   : > { %v986_v25 = vpop.permute.xlu1 %985 }
 0x5b3   : > { %v991_v27 = vsel %vm310_vm3, %v986_v25, 0 }
 0x5b4   : > { %v1537_v6 = vpop.eup %1536 }
 0x5b5   : > { %v529_v8 = vsel %vm294_vm4, %v1537_v6, 0.0  ;;  %v532_v9 = vpack.c.bf16 %v1537_v6, %v1537_v6  ;;  %v1539_v10 = vpop.eup %1538 }
 0x5b6   : > { %530 = vadd.xlane.f32.xlu0 %v529_v8  ;;  %v981_v12 = vsel %vm294_vm4, %v1539_v10, 0.0  ;;  %v1099_v28 = vpop.permute.xlu1 %1098  ;;  %v984_v30 = vpack.c.bf16 %v1539_v10, %v1539_v10 }
 0x5b7   : > { %1408 = vmatmul.mubr.msk.bf16.vlgmr.msra.gmra.mxu1 %vm294_vm4, %v532_v9  ;;  %v1104_v33 = vsel %vm310_vm3, %v1099_v28, 0 }
 0x5b8   : > { %1418 = vmatpush3.bf16.msra.mxu1 %v652_v11  ;;  %1419 = vmatprep.mubr.msk.bf16.mxu1 %vm1583_vm1, %v1582_v1 }
 0x5b9   : > { %1429 = vmatprep.subr.bf16.mxu1 %v1582_v1 }
 0x5ba   : > { %982 = vadd.xlane.f32.xlu0 %v981_v12 }
 0x5bf   : > { %1420 = vmatmul.mubr.msk.bf16.vlgmr.msra.gmra.mxu1 %vm294_vm4, %v645_v14 }
 0x5c0   : > { %1430 = vmatpush3.bf16.msra.mxu1 %v765_v16  ;;  %1431 = vmatprep.mubr.msk.bf16.mxu1 %vm1583_vm1, %v1582_v1 }
 0x5c1   : > { %1441 = vmatprep.subr.bf16.mxu1 %v1582_v1 }
 0x5c3   : > { %v1090_v17 = vpop.xlane.xlu0 %1089 }
 0x5c4   : > { %v1091_v20 = vsub.f32 %v1783_v40, %v1090_v17 }
 0x5c6   : > { %v1092_v22 = vmul.f32 1.442695, %v1091_v20 }
 0x5c7   : > { %1432 = vmatmul.mubr.msk.bf16.vlgmr.msra.gmra.mxu1 %vm294_vm4, %v758_v21  ;;  %v418_v24 = vpop.xlane.xlu0 %417 }
 0x5c8   : > { %1540 = vpow2.f32 %v1092_v22  ;;  %1442 = vmatpush3.bf16.msra.mxu1 %v878_v23  ;;  %1443 = vmatprep.mubr.msk.bf16.mxu1 %vm1583_vm1, %v1582_v1 }
 0x5c9   : > { %1542 = vrcp.f32 %v418_v24  ;;  %1453 = vmatprep.subr.bf16.mxu1 %v1582_v1 }
 0x5cf   : > { %1444 = vmatmul.mubr.msk.bf16.vlgmr.msra.gmra.mxu1 %vm294_vm4, %v871_v26 }
 0x5d0   : > { %1454 = vmatpush3.bf16.msra.mxu1 %v991_v27  ;;  %1455 = vmatprep.mubr.msk.bf16.mxu1 %vm1583_vm1, %v1582_v1 }
 0x5d1   : > { %1465 = vmatprep.subr.bf16.mxu1 %v1582_v1 }
 0x5d5   : > { %v1541_v29 = vpop.eup %1540 }
 0x5d6   : > { %v1543_v31 = vpop.eup %1542  ;;  %v1094_v32 = vsel %vm294_vm4, %v1541_v29, 0.0  ;;  %v1097_v36 = vpack.c.bf16 %v1541_v29, %v1541_v29 }
 0x5d7   : > { %v469_v34 = vmul.f32 %v1543_v31, %v1774_v18  ;;  %1456 = vmatmul.mubr.msk.bf16.vlgmr.msra.gmra.mxu1 %vm294_vm4, %v984_v30  ;;  %1095 = vadd.xlane.f32.xlu1 %v1094_v32 }
 0x5d8   : > { %1466 = vmatpush3.bf16.msra.mxu1 %v1104_v33  ;;  %1467 = vmatprep.mubr.msk.bf16.mxu1 %vm1583_vm1, %v1582_v1  ;;  %v644_v1 = vpop.xlane.xlu0 %643 }
 0x5d9   : > { %v470_v35 = vpack.c.bf16 %v469_v34, %v469_v34 }
 0x5db   : > { %1297 = vst.msk [vmem:[%s1833_s9 + $0x4] sm:$0xf] %vm357_vm5, %v470_v35 }
 0x5df   : > { %1468 = vmatmul.mubr.msk.bf16.vlgmr.msra.gmra.mxu1 %vm294_vm4, %v1097_v36 }
 0x5e2   : > { %v1178_v26 = vld [vmem:[%s1833_s9 + $0x4] sm:$0xf] (%p1647_p4) }
 0x5e3   : > { %1179 = vst [vmem:[%s1159_s19 + $0x8] sm:$0xf] (%p1647_p4), %v1178_v26 }
 0x5e7   : > { %v303_v38 = vpop.xlane.xlu1 %302 }
 0x5e8   : > { %1544 = vrcp.f32 %v303_v38 }
 0x5f5   : > { %v1545_v18 = vpop.eup %1544 }
 0x5f6   : > { %v355_v39 = vmul.f32 %v1545_v18, %v1731_v44 }
 0x5f8   : > { %v356_v40 = vpack.c.bf16 %v355_v39, %v355_v39 }
 0x5fa   : > { %358 = vst.msk [vmem:[%s1833_s9] sm:$0xf] %vm357_vm5, %v356_v40 }
 0x601   : > { %v1176_v25 = vld [vmem:[%s1833_s9] sm:$0xf] (%p1647_p4) }
 0x602   : > { %1177 = vst [vmem:[%s1159_s19] sm:$0xf] (%p1647_p4), %v1176_v25 }
 0x62b   : > { %v757_v41 = vpop.xlane.xlu0 %756 }
 0x633   : > { %v870_v42 = vpop.xlane.xlu0 %869 }
 0x63f   : > { %v531_v43 = vpop.xlane.xlu0 %530 }
 0x640   : > { %1546 = vrcp.f32 %v531_v43 }
 0x641   : > { %1548 = vrcp.f32 %v644_v1 }
 0x642   : > { %1550 = vrcp.f32 %v757_v41 }
 0x643   : > { %1552 = vrcp.f32 %v870_v42  ;;  %v983_v58 = vpop.xlane.xlu0 %982 }
 0x644   : > { %1554 = vrcp.f32 %v983_v58 }
 0x64d   : > { %v1547_v46 = vpop.eup %1546 }
 0x64e   : > { %v1549_v51 = vpop.eup %1548 }
 0x64f   : > { %v1551_v57 = vpop.eup %1550 }
 0x650   : > { %v1553_v0 = vpop.eup %1552 }
 0x651   : > { %v1555_v9 = vpop.eup %1554 }
 0x660   : > { %v1096_v2 = vpop.xlane.xlu1 %1095 }
 0x661   : > { %1556 = vrcp.f32 %v1096_v2 }
 0x66e   : > { %v1557_v17 = vpop.eup %1556 }
 0x677   : > { %v575_v47 = vpop.f32.mrf.mxu1 }
 0x678   : > { %v582_v48 = vmul.f32 %v1547_v46, %v575_v47 }
 0x679   : > { %v1409_v49 = vpop.f32.mrf.mxu1 }
 0x67a   : > { %v583_v45 = vpack.c.bf16 %v582_v48, %v582_v48 }
 0x67b   : > { %v578_v50 = vpop.f32.mrf.mxu1 }
 0x67c   : > { %1300 = vst.msk [vmem:[%s1833_s9 + $0x8] sm:$0xf] %vm357_vm5, %v583_v45 }
 0x67d   : > { %v1410_v44 = vpop.f32.mrf.mxu1 }
 0x67f   : > { %v688_v52 = vpop.f32.mrf.mxu1 }
 0x680   : > { %v695_v53 = vmul.f32 %v1549_v51, %v688_v52 }
 0x681   : > { %v1421_v54 = vpop.f32.mrf.mxu1 }
 0x682   : > { %v696_v55 = vpack.c.bf16 %v695_v53, %v695_v53 }
 0x683   : > { %v691_v56 = vpop.f32.mrf.mxu1  ;;  %v1180_v27 = vld [vmem:[%s1833_s9 + $0x8] sm:$0xf] (%p1647_p4) }
 0x684   : > { %1303 = vst.msk [vmem:[%s1833_s9 + $0xc] sm:$0xf] %vm357_vm5, %v696_v55  ;;  %1181 = vst [vmem:[%s1159_s19 + $0x10] sm:$0xf] (%p1647_p4), %v1180_v27 }
 0x685   : > { %v1422_v15 = vpop.f32.mrf.mxu1 }
 0x687   : > { %v801_v59 = vpop.f32.mrf.mxu1 }
 0x688   : > { %v808_v60 = vmul.f32 %v1551_v57, %v801_v59 }
 0x689   : > { %v1433_v61 = vpop.f32.mrf.mxu1 }
 0x68a   : > { %v809_v62 = vpack.c.bf16 %v808_v60, %v808_v60 }
 0x68b   : > { %v804_v37 = vpop.f32.mrf.mxu1  ;;  %v1182_v28 = vld [vmem:[%s1833_s9 + $0xc] sm:$0xf] (%p1647_p4) }
 0x68c   : > { %1306 = vst.msk [vmem:[%s1833_s9 + $0x10] sm:$0xf] %vm357_vm5, %v809_v62  ;;  %1183 = vst [vmem:[%s1159_s19 + $0x18] sm:$0xf] (%p1647_p4), %v1182_v28 }
 0x68d   : > { %v1434_v63 = vpop.f32.mrf.mxu1 }
 0x68f   : > { %v914_v3 = vpop.f32.mrf.mxu1 }
 0x690   : > { %v921_v4 = vmul.f32 %v1553_v0, %v914_v3 }
 0x691   : > { %v1445_v5 = vpop.f32.mrf.mxu1 }
 0x692   : > { %v922_v6 = vpack.c.bf16 %v921_v4, %v921_v4 }
 0x693   : > { %v917_v7 = vpop.f32.mrf.mxu1  ;;  %v1184_v29 = vld [vmem:[%s1833_s9 + $0x10] sm:$0xf] (%p1647_p4) }
 0x694   : > { %1309 = vst.msk [vmem:[%s1833_s9 + $0x14] sm:$0xf] %vm357_vm5, %v922_v6  ;;  %1185 = vst [vmem:[%s1159_s19 + $0x20] sm:$0xf] (%p1647_p4), %v1184_v29 }
 0x695   : > { %v1446_v8 = vpop.f32.mrf.mxu1 }
 0x697   : > { %v1027_v10 = vpop.f32.mrf.mxu1 }
 0x698   : > { %v1034_v11 = vmul.f32 %v1555_v9, %v1027_v10 }
 0x699   : > { %v1457_v12 = vpop.f32.mrf.mxu1 }
 0x69a   : > { %v1035_v13 = vpack.c.bf16 %v1034_v11, %v1034_v11 }
 0x69b   : > { %v1030_v14 = vpop.f32.mrf.mxu1  ;;  %v1186_v30 = vld [vmem:[%s1833_s9 + $0x14] sm:$0xf] (%p1647_p4) }
 0x69c   : > { %1312 = vst.msk [vmem:[%s1833_s9 + $0x18] sm:$0xf] %vm357_vm5, %v1035_v13  ;;  %1187 = vst [vmem:[%s1159_s19 + $0x28] sm:$0xf] (%p1647_p4), %v1186_v30 }
 0x69d   : > { %v1458_v16 = vpop.f32.mrf.mxu1 }
 0x69f   : > { %v1140_v19 = vpop.f32.mrf.mxu1 }
 0x6a0   : > { %v1147_v20 = vmul.f32 %v1557_v17, %v1140_v19 }
 0x6a1   : > { %v1469_v21 = vpop.f32.mrf.mxu1  ;;  %1157 = sbr.rel (!%p1647_p4) target bundleno = 1709 (0x6ad), region = 32 }
 0x6a2   : > { %v1148_v22 = vpack.c.bf16 %v1147_v20, %v1147_v20 }
 0x6a3   : > { %v1143_v23 = vpop.f32.mrf.mxu1  ;;  %v1188_v31 = vld [vmem:[%s1833_s9 + $0x18] sm:$0xf] (%p1647_p4) }
 0x6a4   : > { %1315 = vst.msk [vmem:[%s1833_s9 + $0x1c] sm:$0xf] %vm357_vm5, %v1148_v22  ;;  %1189 = vst [vmem:[%s1159_s19 + $0x30] sm:$0xf] (%p1647_p4), %v1188_v31 }
 0x6a5   : > { %v1470_v24 = vpop.f32.mrf.mxu1 }
 0x6ab   : > { %v1190_v32 = vld [vmem:[%s1833_s9 + $0x1c] sm:$0xf] }
 0x6ac   : > { %1191 = vst [vmem:[%s1159_s19 + $0x38] sm:$0xf] %v1190_v32 }
 0x6ad PF: > { %p9_p8 = scmp.ge.s32.totalorder %s1637_s13, 4   ;;  %s1881_s9 = smov %s1576_s10 }
 0x6ae   : > { %s1882_s10 = smov %s1645_s16  ;;  %s1883_s11 = smov %s1637_s13 }
 0x6af   :  { %11 = sbr.rel (!%p9_p8) target bundleno = 2 (0x2), region = 106 }

</bundles_post_ra>
